<compile_context>
chip_gen: v7x
topology: tpu7x:2x2x1
jax: 0.10.0
libtpu: 0.0.40
codegen_flags: <defaults>
</compile_context>

<pallas_src>
import functools

import numpy as np
import jax
import jax.numpy as jnp
from jax.experimental import pallas as pl
from jax.experimental.pallas import tpu as pltpu

# ---------------------------------------------------------------------------
# Synthetic vocabulary constants (mol_opt globals)
# ---------------------------------------------------------------------------
SYMBOLS = ["C", "N", "O", "S", "F", "Cl", "Br", "I", "P", "*"]
FORMAL_CHARGES = [-2, -1, 0, 1, 2]
BOND_TYPES = [None, "SINGLE", "DOUBLE", "TRIPLE", "AROMATIC"]
n_SYMBOLS = len(SYMBOLS)                 # 10
n_FORMAL_CHARGES = len(FORMAL_CHARGES)   # 5
n_BOND_TYPES = len(BOND_TYPES)           # 5

PC_HIDDEN = 32     # args.pc_hidden
PRED_HIDDEN = 32   # args.pred_hidden
NEG_SLOPE = 0.01   # F.leaky_relu default negative_slope

SC_HIDDEN = 2 * PRED_HIDDEN              # 64: fused symbols|charges fc1 width
SC_OUT = n_SYMBOLS + n_FORMAL_CHARGES    # 15 (symbols | charges)
SC_OUT_PAD = 16                          # lane-pad the fused atom-head output
BOND_H = 2 * PRED_HIDDEN                 # 64: bonds fc1 hidden width
AB_W = 2 * BOND_H                        # 128: [a | b] projection width
W1_ALL = SC_HIDDEN + AB_W                # 192: fused fc1 output width
NB_PAD = 128                             # lane-dense bond-logit width (cols >=5 are zeros)

PAIRS_TARGET = 2048                      # ~pair-rows per bond grid step (VMEM-bounded)


def _round_up(v, m):
    return ((v + m - 1) // m) * m


def _cdiv(a, b):
    return -(-a // b)


# ---------------------------------------------------------------------------
# Kernel 1: fused per-atom heads (grid over row tiles).
#   h   = x @ [W1s|W1c|W1b_a|W1b_b] + [b1s|b1c|0|b1b]          (one MXU pass)
#   sc  = leaky_relu(h[:, :64]) @ W2_blockdiag + [b2s|b2c|0]
#   ab  = h[:, 64:]        (bonds fc1 halves, fc1 bias already folded into 'b')
# ---------------------------------------------------------------------------
def _atom_heads_kernel(x_ref, w1_ref, b1_ref, w2sc_ref, b2sc_ref, sc_ref, ab_ref):
    x = x_ref[...]                                                     # (T, 32)
    h = jnp.dot(x, w1_ref[...], preferred_element_type=jnp.float32) + b1_ref[...]
    hsc = h[:, :SC_HIDDEN]
    hsc = jnp.maximum(hsc, NEG_SLOPE * hsc)                            # leaky_relu
    sc_ref[...] = (jnp.dot(hsc, w2sc_ref[...], preferred_element_type=jnp.float32)
                   + b2sc_ref[...]).astype(sc_ref.dtype)
    ab_ref[...] = h[:, SC_HIDDEN:].astype(ab_ref.dtype)                # (T, 128)


def atom_heads(x_molpad, fused, tile_rows):
    total_rows = x_molpad.shape[0]
    const = lambda i: (0, 0)
    return pl.pallas_call(
        _atom_heads_kernel,
        out_shape=(jax.ShapeDtypeStruct((total_rows, SC_OUT_PAD), jnp.float32),
                   jax.ShapeDtypeStruct((total_rows, AB_W), jnp.float32)),
        grid_spec=pltpu.PrefetchScalarGridSpec(
            num_scalar_prefetch=0,
            grid=(total_rows // tile_rows,),
            in_specs=[
                pl.BlockSpec((tile_rows, PC_HIDDEN), lambda i: (i, 0)),
                pl.BlockSpec((PC_HIDDEN, W1_ALL), const),
                pl.BlockSpec((1, W1_ALL), const),
                pl.BlockSpec((SC_HIDDEN, SC_OUT_PAD), const),
                pl.BlockSpec((1, SC_OUT_PAD), const),
            ],
            out_specs=[
                pl.BlockSpec((tile_rows, SC_OUT_PAD), lambda i: (i, 0)),
                pl.BlockSpec((tile_rows, AB_W), lambda i: (i, 0)),
            ]),
        compiler_params=pltpu.CompilerParams(dimension_semantics=("parallel",)),
    )(x_molpad, fused["w1all"], fused["b1all"], fused["w2sc"], fused["b2sc"])
    # TODO(synk): ab_all could be stored in bfloat16 to halve inter-kernel HBM
    # traffic; kept f32 to avoid 8-row bf16 tiling edge cases on tiny blocks.


# ---------------------------------------------------------------------------
# Kernel 2: pairwise bond head, G molecules per grid step.
#   big[m,i,j] = [a_i + b_j + b1 | a_j + b_i + b1]  (= [h_ij | h_ji], 128 lanes)
#   L + L^T    = leaky(big) @ [W2; W2] + 2*b2       (single lane-dense matmul)
#   diagonal   : bond types 0..3 -> -1000, type 4.. -> +1000
# ---------------------------------------------------------------------------
def _bond_pairs_kernel(ab_ref, w2_ref, b2_ref, o_ref, *, g_mols, npad):
    ab = ab_ref[...]                                   # (G*npad, 128) = [a_i | b_i+b1]
    ba = pltpu.roll(ab, shift=BOND_H, axis=1)          # (G*npad, 128) = [b_i+b1 | a_i]
    big = (ab.reshape(g_mols, npad, 1, AB_W)
           + ba.reshape(g_mols, 1, npad, AB_W))        # (G, npad, npad, 128)
    big = jnp.maximum(big, NEG_SLOPE * big)            # leaky_relu, full-lane dense
    h2 = big.reshape(g_mols * npad * npad, AB_W)       # (G*nsq, 128)

    # (leaky(h_ij) + leaky(h_ji)) @ W2 + 2*b2 via stacked [W2; W2] -- one matmul.
    logits = (jnp.dot(h2, w2_ref[...], preferred_element_type=jnp.float32)
              + b2_ref[...])                           # (G*nsq, 128)

    # diagonal override via i == j (no integer modulo)
    ii = jax.lax.broadcasted_iota(jnp.int32, (g_mols, npad, npad, NB_PAD), 1)
    jj = jax.lax.broadcasted_iota(jnp.int32, (g_mols, npad, npad, NB_PAD), 2)
    diag = (ii == jj).reshape(g_mols * npad * npad, NB_PAD)
    kk = jax.lax.broadcasted_iota(jnp.int32, (1, NB_PAD), 1)
    diag_vals = jnp.where(kk < n_BOND_TYPES - 1, jnp.float32(-1000.0),
                          jnp.float32(1000.0))
    o_ref[...] = jnp.where(diag, diag_vals, logits).astype(o_ref.dtype)


def bond_pairs(ab_all, w2stk, b2x2, num_groups, g_mols, npad):
    nsq = npad * npad
    const = lambda g: (0, 0)
    kern = functools.partial(_bond_pairs_kernel, g_mols=g_mols, npad=npad)
    return pl.pallas_call(
        kern,
        out_shape=jax.ShapeDtypeStruct((num_groups * g_mols * nsq, NB_PAD), jnp.float32),
        grid_spec=pltpu.PrefetchScalarGridSpec(
            num_scalar_prefetch=0,
            grid=(num_groups,),
            in_specs=[
                pl.BlockSpec((g_mols * npad, AB_W), lambda g: (g, 0)),
                pl.BlockSpec((AB_W, NB_PAD), const),
                pl.BlockSpec((1, NB_PAD), const),
            ],
            out_specs=pl.BlockSpec((g_mols * nsq, NB_PAD), lambda g: (g, 0))),
        compiler_params=pltpu.CompilerParams(
            dimension_semantics=("parallel",),
            vmem_limit_bytes=32 * 1024 * 1024),
    )(ab_all, w2stk, b2x2)
    # TODO(synk): for single molecules beyond ~100 atoms, additionally tile the
    # i-axis of the pair block inside the kernel to bound the VMEM intermediate.


# ---------------------------------------------------------------------------
# Parameter init (PyTorch nn.Linear-style uniform fan-in init) + weight fusion
# ---------------------------------------------------------------------------
def init_params(key):
    def linear(k, fan_in, fan_out):
        k1, k2 = jax.random.split(k)
        bound = 1.0 / jnp.sqrt(jnp.float32(fan_in))
        w = jax.random.uniform(k1, (fan_in, fan_out), jnp.float32, -bound, bound)
        b = jax.random.uniform(k2, (1, fan_out), jnp.float32, -bound, bound)
        return w, b

    keys = jax.random.split(key, 6)
    return {
        "fc1_SYMBOLS": linear(keys[0], PC_HIDDEN, PRED_HIDDEN),
        "fc2_SYMBOLS": linear(keys[1], PRED_HIDDEN, n_SYMBOLS),
        "fc1_CHARGES": linear(keys[2], PC_HIDDEN, PRED_HIDDEN),
        "fc2_CHARGES": linear(keys[3], PRED_HIDDEN, n_FORMAL_CHARGES),
        "fc1_BONDS": linear(keys[4], 2 * PC_HIDDEN, 2 * PRED_HIDDEN),
        "fc2_BONDS": linear(keys[5], 2 * PRED_HIDDEN, n_BOND_TYPES),
    }


def fuse_params(params):
    """Build fused / lane-padded weights consumed by the kernels (done once)."""
    w1s, b1s = params["fc1_SYMBOLS"]; w2s, b2s = params["fc2_SYMBOLS"]
    w1c, b1c = params["fc1_CHARGES"]; w2c, b2c = params["fc2_CHARGES"]
    w1b, b1b = params["fc1_BONDS"];   w2b, b2b = params["fc2_BONDS"]

    # single fc1 pass: [symbols | charges | bonds-a | bonds-b]  -> (32, 192)
    w1all = jnp.concatenate([w1s, w1c, w1b[:PC_HIDDEN], w1b[PC_HIDDEN:]], axis=1)
    # b1_BONDS folded into the 'b' half (per-atom instead of per-pair)
    b1all = jnp.concatenate(
        [b1s, b1c, jnp.zeros((1, BOND_H), jnp.float32), b1b], axis=1)

    # symbols+charges fc2: block diagonal, padded to 16 lanes
    w2sc = jnp.zeros((SC_HIDDEN, SC_OUT_PAD), jnp.float32)
    w2sc = w2sc.at[:PRED_HIDDEN, :n_SYMBOLS].set(w2s)
    w2sc = w2sc.at[PRED_HIDDEN:, n_SYMBOLS:SC_OUT].set(w2c)
    b2sc = jnp.zeros((1, SC_OUT_PAD), jnp.float32)
    b2sc = b2sc.at[:, :n_SYMBOLS].set(b2s)
    b2sc = b2sc.at[:, n_SYMBOLS:SC_OUT].set(b2c)

    # bonds fc2 stacked twice (symmetrization folded into the matmul), lane-padded
    w2stk = jnp.zeros((AB_W, NB_PAD), jnp.float32)
    w2stk = w2stk.at[:BOND_H, :n_BOND_TYPES].set(w2b)
    w2stk = w2stk.at[BOND_H:, :n_BOND_TYPES].set(w2b)
    # bias counted twice in L + L^T, exactly as in the PyTorch reference
    b2x2 = jnp.zeros((1, NB_PAD), jnp.float32).at[:, :n_BOND_TYPES].set(2.0 * b2b)

    return dict(w1all=w1all, b1all=b1all, w2sc=w2sc, b2sc=b2sc,
                w2stk=w2stk, b2x2=b2x2)


# ---------------------------------------------------------------------------
# Forward pass ('pointwise' model_type, lex == ley for every molecule)
# ---------------------------------------------------------------------------
def mol_opt_decoder_forward(fused, x_embedding, x_scope, y_scope):
    num_mols = len(x_scope)
    for (_, lex), (_, ley) in zip(x_scope, y_scope):
        assert lex == ley, "pointwise path kernelized only for lex == ley"

    max_ley = max(ley for _, ley in y_scope)
    npad = max(8, _round_up(max_ley, 8))
    nsq = npad * npad

    # ---- molecules per bond grid step: ~PAIRS_TARGET pair-rows, >=2 steps when possible ----
    g_mols = max(1, min(num_mols, PAIRS_TARGET // nsq))
    if num_mols >= 2 and g_mols >= num_mols:
        g_mols = (num_mols + 1) // 2          # keep >=2 grid steps (v7x: 2 TensorCores)
    num_groups = _cdiv(num_mols, g_mols)
    rows_per_group = g_mols * npad

    # ---- atom-kernel tiling: ~512-row tiles, group-aligned so ab_all feeds kernel 2 as-is ----
    total_rows = num_groups * rows_per_group
    if total_rows <= 2048:
        atom_tile = total_rows
    else:
        k = max(1, 512 // rows_per_group)
        atom_tile = k * rows_per_group
        num_groups = _cdiv(num_groups, k) * k
        total_rows = num_groups * rows_per_group
    num_mols_pad = num_groups * g_mols

    # ---- host-side index plumbing: molecule-padded layout (one 32-wide gather up front) ----
    gat = np.zeros((num_mols_pad, npad), np.int32)       # padded rows -> row 0 (discarded later)
    for m, (stx, lex) in enumerate(x_scope):
        gat[m, :lex] = stx + np.arange(lex, dtype=np.int32)
    x_molpad = jnp.take(x_embedding, jnp.asarray(gat.reshape(-1)), axis=0)

    # ---- kernel 1: fused atom heads over every (padded) atom row ----
    sc_all, ab_all = atom_heads(x_molpad, fused, atom_tile)

    # symbols / charges gathered back into the original per-molecule atom order
    sc_idx = np.concatenate(
        [m * npad + np.arange(lex, dtype=np.int32) for m, (_, lex) in enumerate(x_scope)])
    sc_sel = jnp.take(sc_all, jnp.asarray(sc_idx), axis=0)
    symbols_logits = sc_sel[:, :n_SYMBOLS]
    charges_logits = sc_sel[:, n_SYMBOLS:SC_OUT]

    # ---- kernel 2: batched pairwise bond head ----
    bonds_pad = bond_pairs(ab_all, fused["w2stk"], fused["b2x2"],
                           num_groups, g_mols, npad)     # (num_mols_pad*nsq, 128)

    # single flat-index gather of the valid (m, i<ley, j<ley) pairs
    bidx = np.concatenate([
        m * nsq + np.repeat(np.arange(ley), ley) * npad + np.tile(np.arange(ley), ley)
        for m, (_, ley) in enumerate(y_scope)]).astype(np.int32)
    bonds_logits = jnp.take(bonds_pad, jnp.asarray(bidx), axis=0)[:, :n_BOND_TYPES]

    return symbols_logits, charges_logits, bonds_logits


# ---------------------------------------------------------------------------
# Pure-JAX reference (mirrors the PyTorch forward) for a correctness check
# ---------------------------------------------------------------------------
def reference_forward(params, x_embedding, x_scope, y_scope):
    def leaky(v):
        return jnp.where(v > 0, v, NEG_SLOPE * v)

    w1s, b1s = params["fc1_SYMBOLS"]; w2s, b2s = params["fc2_SYMBOLS"]
    w1c, b1c = params["fc1_CHARGES"]; w2c, b2c = params["fc2_CHARGES"]
    w1b, b1b = params["fc1_BONDS"];   w2b, b2b = params["fc2_BONDS"]

    syms, chgs, bonds = [], [], []
    for idx, (stx, lex) in enumerate(x_scope):
        _, ley = y_scope[idx]
        yhat = x_embedding[stx:stx + lex]
        syms.append(leaky(yhat @ w1s + b1s) @ w2s + b2s)
        chgs.append(leaky(yhat @ w1c + b1c) @ w2c + b2c)
        x1 = jnp.broadcast_to(yhat[:, None, :], (ley, ley, PC_HIDDEN))
        x2 = jnp.broadcast_to(yhat[None, :, :], (ley, ley, PC_HIDDEN))
        pair = jnp.concatenate([x1, x2], axis=-1)
        L = leaky(pair @ w1b + b1b) @ w2b + b2b
        L = L + jnp.swapaxes(L, 0, 1)
        eye = jnp.eye(ley, dtype=bool)[:, :, None]
        kk = jnp.arange(n_BOND_TYPES)[None, None, :]
        L = jnp.where(eye & (kk < n_BOND_TYPES - 1), -1000.0, L)
        L = jnp.where(eye & (kk == n_BOND_TYPES - 1), 1000.0, L)
        bonds.append(L.reshape(-1, n_BOND_TYPES))
    return (jnp.concatenate(syms), jnp.concatenate(chgs), jnp.concatenate(bonds))


# TODO(synk): 'slot' (SlotAttention), 'ffn' (compute_barycenter), 'molemb' and
# autoregressive 'transformer' / 'transformer-ae' branches are not kernelized.

if __name__ == "__main__":
    key = jax.random.PRNGKey(0)
    pkey, xkey = jax.random.split(key)
    params = init_params(pkey)
    fused = fuse_params(params)

    # Two small molecules: 6 and 8 atoms -> x_embedding (14, PC_HIDDEN)
    x_scope = [(0, 6), (6, 8)]
    y_scope = [(0, 6), (6, 8)]
    num_atoms = sum(l for _, l in x_scope)
    x_embedding = jax.random.normal(xkey, (num_atoms, PC_HIDDEN), jnp.float32)

    out = mol_opt_decoder_forward(fused, x_embedding, x_scope, y_scope)
    sym_l, chg_l, bond_l = jax.block_until_ready(out)

    assert sym_l.shape == (num_atoms, n_SYMBOLS)
    assert chg_l.shape == (num_atoms, n_FORMAL_CHARGES)
    assert bond_l.shape == (6 * 6 + 8 * 8, n_BOND_TYPES)

    with jax.default_matmul_precision("float32"):
        ref_s, ref_c, ref_b = reference_forward(params, x_embedding, x_scope, y_scope)
    np.testing.assert_allclose(np.asarray(sym_l), np.asarray(ref_s), rtol=5e-2, atol=1e-1)
    np.testing.assert_allclose(np.asarray(chg_l), np.asarray(ref_c), rtol=5e-2, atol=1e-1)
    np.testing.assert_allclose(np.asarray(bond_l), np.asarray(ref_b), rtol=5e-2, atol=1e-1)

    print("KERNEL_OK")
</pallas_src>

<mosaic_0001>
module attributes {stable_mosaic.version = 11 : i64} {
  func.func @_atom_heads_kernel(%arg0: i32, %arg1: memref<16x32xf32, #tpu.memory_space<vmem>>, %arg2: memref<32x192xf32, #tpu.memory_space<vmem>>, %arg3: memref<1x192xf32, #tpu.memory_space<vmem>>, %arg4: memref<64x16xf32, #tpu.memory_space<vmem>>, %arg5: memref<1x16xf32, #tpu.memory_space<vmem>>, %arg6: memref<16x16xf32, #tpu.memory_space<vmem>>, %arg7: memref<16x128xf32, #tpu.memory_space<vmem>>) attributes {dimension_semantics = [#tpu.dimension_semantics<parallel>], iteration_bounds = array<i64: 1>, scalar_prefetch = 0 : i64, scratch_operands = 0 : i64, tpu.core_type = #tpu.core_type<tc>, window_params = [{transform_indices = @transform_0, window_bounds = array<i64: 16, 32>}, {pipeline_mode = #tpu.pipeline_mode<synchronous>, transform_indices = @transform_1, window_bounds = array<i64: 32, 192>}, {pipeline_mode = #tpu.pipeline_mode<synchronous>, transform_indices = @transform_2, window_bounds = array<i64: 1, 192>}, {pipeline_mode = #tpu.pipeline_mode<synchronous>, transform_indices = @transform_3, window_bounds = array<i64: 64, 16>}, {pipeline_mode = #tpu.pipeline_mode<synchronous>, transform_indices = @transform_4, window_bounds = array<i64: 1, 16>}, {transform_indices = @transform_5, window_bounds = array<i64: 16, 16>}, {transform_indices = @transform_6, window_bounds = array<i64: 16, 128>}]} {
    %c0 = arith.constant 0 : index
    %c0_0 = arith.constant 0 : index
    %0 = vector.load %arg1[%c0, %c0_0] : memref<16x32xf32, #tpu.memory_space<vmem>>, vector<16x32xf32>
    %c0_1 = arith.constant 0 : index
    %c0_2 = arith.constant 0 : index
    %1 = vector.load %arg2[%c0_1, %c0_2] : memref<32x192xf32, #tpu.memory_space<vmem>>, vector<32x192xf32>
    %cst = arith.constant dense<0.000000e+00> : vector<16x192xf32>
    %2 = tpu.matmul %0, %1, %cst {dimension_numbers = #tpu.dot_dimension_numbers<[1], [0], [0], [1], [0, 0, 1, 1], [], []>} : vector<16x32xf32>, vector<32x192xf32>, vector<16x192xf32> -> vector<16x192xf32>
    %c0_3 = arith.constant 0 : index
    %c0_4 = arith.constant 0 : index
    %3 = vector.load %arg3[%c0_3, %c0_4] : memref<1x192xf32, #tpu.memory_space<vmem>>, vector<1x192xf32>
    %4 = vector.broadcast %3 : vector<1x192xf32> to vector<16x192xf32>
    %5 = arith.addf %2, %4 : vector<16x192xf32>
    %6 = vector.extract_strided_slice %5 {offsets = [0, 0], sizes = [16, 64], strides = [1, 1]} : vector<16x192xf32> to vector<16x64xf32>
    %cst_5 = arith.constant 0.00999999977 : f32
    %7 = vector.broadcast %cst_5 : f32 to vector<16x64xf32>
    %8 = arith.mulf %7, %6 : vector<16x64xf32>
    %9 = arith.maximumf %6, %8 : vector<16x64xf32>
    %c0_6 = arith.constant 0 : index
    %c0_7 = arith.constant 0 : index
    %10 = vector.load %arg4[%c0_6, %c0_7] : memref<64x16xf32, #tpu.memory_space<vmem>>, vector<64x16xf32>
    %cst_8 = arith.constant dense<0.000000e+00> : vector<16x16xf32>
    %11 = tpu.matmul %9, %10, %cst_8 {dimension_numbers = #tpu.dot_dimension_numbers<[1], [0], [0], [1], [0, 0, 1, 1], [], []>} : vector<16x64xf32>, vector<64x16xf32>, vector<16x16xf32> -> vector<16x16xf32>
    %c0_9 = arith.constant 0 : index
    %c0_10 = arith.constant 0 : index
    %12 = vector.load %arg5[%c0_9, %c0_10] : memref<1x16xf32, #tpu.memory_space<vmem>>, vector<1x16xf32>
    %13 = vector.broadcast %12 : vector<1x16xf32> to vector<16x16xf32>
    %14 = arith.addf %11, %13 : vector<16x16xf32>
    %c0_11 = arith.constant 0 : index
    %c0_12 = arith.constant 0 : index
    %15 = vector.load %arg6[%c0_11, %c0_12] : memref<16x16xf32, #tpu.memory_space<vmem>>, vector<16x16xf32>
    tpu.vector_store %arg6[%c0_11, %c0_12], %14 {strides = array<i32>} : memref<16x16xf32, #tpu.memory_space<vmem>>, vector<16x16xf32>,
    %16 = vector.extract_strided_slice %5 {offsets = [0, 64], sizes = [16, 128], strides = [1, 1]} : vector<16x192xf32> to vector<16x128xf32>
    %c0_13 = arith.constant 0 : index
    %c0_14 = arith.constant 0 : index
    %17 = vector.load %arg7[%c0_13, %c0_14] : memref<16x128xf32, #tpu.memory_space<vmem>>, vector<16x128xf32>
    tpu.vector_store %arg7[%c0_13, %c0_14], %16 {strides = array<i32>} : memref<16x128xf32, #tpu.memory_space<vmem>>, vector<16x128xf32>,
    return
  }
  func.func @transform_0(%arg0: i32) -> (i32, i32) {
    %c0_i32 = arith.constant 0 : i32
    %c0_i32_0 = arith.constant 0 : i32
    return %arg0, %c0_i32 : i32, i32
  }
  func.func @transform_1(%arg0: i32) -> (i32, i32) {
    %c0_i32 = arith.constant 0 : i32
    %c0_i32_0 = arith.constant 0 : i32
    %c0_i32_1 = arith.constant 0 : i32
    return %c0_i32, %c0_i32_0 : i32, i32
  }
  func.func @transform_2(%arg0: i32) -> (i32, i32) {
    %c0_i32 = arith.constant 0 : i32
    %c0_i32_0 = arith.constant 0 : i32
    %c0_i32_1 = arith.constant 0 : i32
    return %c0_i32, %c0_i32_0 : i32, i32
  }
  func.func @transform_3(%arg0: i32) -> (i32, i32) {
    %c0_i32 = arith.constant 0 : i32
    %c0_i32_0 = arith.constant 0 : i32
    %c0_i32_1 = arith.constant 0 : i32
    return %c0_i32, %c0_i32_0 : i32, i32
  }
  func.func @transform_4(%arg0: i32) -> (i32, i32) {
    %c0_i32 = arith.constant 0 : i32
    %c0_i32_0 = arith.constant 0 : i32
    %c0_i32_1 = arith.constant 0 : i32
    return %c0_i32, %c0_i32_0 : i32, i32
  }
  func.func @transform_5(%arg0: i32) -> (i32, i32) {
    %c0_i32 = arith.constant 0 : i32
    %c0_i32_0 = arith.constant 0 : i32
    return %arg0, %c0_i32 : i32, i32
  }
  func.func @transform_6(%arg0: i32) -> (i32, i32) {
    %c0_i32 = arith.constant 0 : i32
    %c0_i32_0 = arith.constant 0 : i32
    return %arg0, %c0_i32 : i32, i32
  }
}

</mosaic_0001>

<bundles_post_ra>
// kernel: tpu_custom_call.1
= control target key start
LH: loop header
LB: loop body
LE: loop exit
PB: predicated region body
PF: predicated region fallthrough
CT: control target
= control target key end

     0   :  { %12 = vsyncpa [#allocation3], 0  ;;  %v396_v7 = vmov 0.0   ;;  %s525_s0 = inlined_call_operand.vmem [shape: f32[16,32], index: 0, kind: input, shape index: {}]   ;;  %s526_s1 = inlined_call_operand.vmem [shape: f32[32,192], index: 1, kind: input, shape index: {}]   ;;  %s527_s2 = inlined_call_operand.vmem [shape: f32[1,192], index: 2, kind: input, shape index: {}]   ;;  %s528_s3 = inlined_call_operand.vmem [shape: f32[64,16], index: 3, kind: input, shape index: {}]   ;;  %s529_s4 = inlined_call_operand.vmem [shape: f32[1,16], index: 4, kind: input, shape index: {}]   ;;  %s530_s5 = inlined_call_operand.hbm [shape: f32[16,16], index: 5, kind: output, shape index: {0}]   ;;  %s531_s6 = inlined_call_operand.hbm [shape: f32[16,128], index: 6, kind: output, shape index: {1}]  }
   0x1   :  { %v27_v0 = vld [vmem:[%s526_s1 + $0x8] sm:$0xff]  ;;  %v29_v1 = vld [vmem:[%s526_s1 + $0x18] sm:$0xff]  ;;  %v26_v2 = vld [vmem:[%s526_s1] sm:$0xff]  ;;  %117 = vmatprep.mubr.f32.mxu0 %v396_v7 }
   0x2   :  { %v318_v3 = vpack.c.bf16 %v29_v1, %v27_v0  ;;  %v28_v4 = vld [vmem:[%s526_s1 + $0x10] sm:$0xff]  ;;  %v31_v5 = vld [vmem:[%s526_s1 + $0x28] sm:$0xff]  ;;  %v33_v6 = vld [vmem:[%s526_s1 + $0x38] sm:$0xff] }
   0x3   :  { %v320_v8 = vpack.c.bf16 %v28_v4, %v26_v2  ;;  %v322_v9 = vpack.c.bf16 %v33_v6, %v31_v5  ;;  %v30_v10 = vld [vmem:[%s526_s1 + $0x20] sm:$0xff]  ;;  %v32_v11 = vld [vmem:[%s526_s1 + $0x30] sm:$0xff]  ;;  %v135_v13 = vld [vmem:[%s528_s3 + $0x8] sm:$0xff] }
   0x4   :  { %319 = vmatprep.subr.bf16.mxu0 %v318_v3  ;;  %v134_v12 = vld [vmem:[%s528_s3] sm:$0xff]  ;;  %v324_v14 = vpack.c.bf16 %v32_v11, %v30_v10  ;;  %v136_v16 = vld [vmem:[%s528_s3 + $0x10] sm:$0xff]  ;;  %v137_v17 = vld [vmem:[%s528_s3 + $0x18] sm:$0xff] }
   0x5   :  { %321 = vmatpush1.bf16.msra.mxu0 %v320_v8  ;;  %v326_v15 = vpack.c.bf16 %v135_v13, %v134_v12  ;;  %v330_v18 = vpack.c.bf16 %v137_v17, %v136_v16 }
   0x6   :  { %323 = vmatprep.subr.bf16.mxu0 %v322_v9 }
   0x7   :  { %13 = vsyncpa [#allocation5], 0  ;;  %327 = vmatprep.subr.bf16.mxu1 %v326_v15  ;;  %v24_v19 = vld [vmem:[%s525_s0] sm:$0xff]  ;;  %vm46_vm0 = vcmask 261120   ;;  %v25_v20 = vld [vmem:[%s525_s0 + $0x8] sm:$0xff]  ;;  %v36_v27 = vlaneseq  ;;  %s397_s9 = smov 64  }
   0x8   :  { %329 = vmatpush3.bf16.msra.mxu1 %v326_v15  ;;  %v138_v21 = vld [vmem:[%s528_s3 + $0x20] sm:$0xff]  ;;  %v139_v22 = vld [vmem:[%s528_s3 + $0x28] sm:$0xff]  ;;  %v140_v24 = vld [vmem:[%s528_s3 + $0x30] sm:$0xff]  ;;  %vm149_vm1 = vcmask 523264  }
   0x9   :  { %325 = vmatpush1.bf16.msra.mxu0 %v324_v14  ;;  %331 = vmatprep.subr.bf16.mxu1 %v330_v18  ;;  %v334_v23 = vpack.c.bf16 %v139_v22, %v138_v21  ;;  %v141_v25 = vld [vmem:[%s528_s3 + $0x38] sm:$0xff]  ;;  %v37_v28 = vshrl.u32 %v36_v27, 7  ;;  %v34_v30 = vld [vmem:[%s527_s2] sm:$0x3]  ;;  %s398_s2 = smov [#allocation4]  }
   0xa   :  { %v338_v26 = vpack.c.bf16 %v141_v25, %v140_v24  ;;  %s269_s3 = sshll.u32 %s398_s2, 4  ;;  %s270_s3 = int_to_ptr.vmem [resolvable:$true] %s269_s3 }
   0xb   :  { %v38_v29 = vsub.s32 0, %v37_v28  ;;  %v42_v32 = vsub.s32 1, %v37_v28  ;;  %s348_s10 = scalar_lea.vmem %s270_s3, 256  ;;  %p353_p1 = scmp.lt.s32.totalorder %s270_s3, %s270_s3 }
   0xc   :  { %284 = vmatmul.mubr.msk.f32.vlgmr.msra.gmra.mrb[0].mxu0 %vm46_vm0, %v24_v19  ;;  %333 = vmatpush3.bf16.msra.mxu1 %v330_v18  ;;  %p349_p0 = scmp.ne.s32.totalorder %s270_s3, %s348_s10  ;;  %p354_p2 = scmp.lt.s32.totalorder %s348_s10, %s348_s10 }
   0xd   :  { %123 = vmatprep.mubr.f32.mxu0 %v396_v7  ;;  %335 = vmatprep.subr.bf16.mxu1 %v334_v23  ;;  %v39_v31 = vrot.slane %v34_v30, %v38_v29  ;;  %v43_v35 = vrot.slane %v34_v30, %v42_v32 }
   0xe   :  { %p355_p3 = por %p354_p2, %p353_p1 }
  0x10   :  { %285 = vmatmul.mubr.msk.f32.gmra.mrb[2].mxu0 %vm46_vm0, %v25_v20  ;;  %337 = vmatpush3.bf16.msra.mxu1 %v334_v23  ;;  %p356_p4 = pnand %p355_p3, %p349_p0 }
  0x11   :  { %339 = vmatprep.subr.bf16.mxu1 %v338_v26 }
  0x14   :  { %341 = vmatpush3.bf16.msra.mxu1 %v338_v26 }
  0xdf   :  { %v119_v33 = vpop.f32.mrb[0].mxu0 }
  0xe0   :  { %v120_v34 = vadd.f32 %v119_v33, %v39_v31  ;;  %v121_v36 = vpop.f32.mrb[1].mxu0 }
  0xe1   :  { %v122_v39 = vadd.f32 %v121_v36, %v43_v35 }
  0xe2   :  { %238 = vrot.lane.b32.xlu0 %v120_v34, %s397_s9  ;;  %v130_v37 = vmul.f32 0.01, %v120_v34 }
  0xe3   :  { %v125_v38 = vpop.f32.mrb[2].mxu0 }
  0xe4   :  { %v126_v40 = vadd.f32 %v125_v38, %v39_v31  ;;  %v127_v41 = vpop.f32.mrb[3].mxu0  ;;  %v132_v42 = vmax.f32 %v120_v34, %v130_v37 }
  0xe5   :  { %v128_v45 = vadd.f32 %v127_v41, %v43_v35 }
  0xe6   :  { %v131_v43 = vmul.f32 0.01, %v126_v40  ;;  %242 = vrot.lane.b32.xlu1 %v126_v40, %s397_s9  ;;  %240 = vrot.lane.b32.xlu0 %v122_v39, %s397_s9 }
  0xe7   :  { %315 = vmatprep.mubr.msk.f32.mxu1 %vm149_vm1, %v132_v42 }
  0xe8   :  { %v133_v44 = vmax.f32 %v126_v40, %v131_v43 }
  0xea   :  { %244 = vrot.lane.b32.xlu1 %v128_v45, %s397_s9  ;;  %316 = vmatmul.mubr.msk.f32.vlgmr.msra.gmra.mrb[0].mxu1 %vm149_vm1, %v133_v44 }
 0x154   :  { %v239_v46 = vpop.permute.xlu0 %238 }
 0x158   :  { %v243_v47 = vpop.permute.xlu1 %242  ;;  %v241_v48 = vpop.permute.xlu0 %240 }
 0x159   :  { %v246_v49 = vsel %vm149_vm1, %v239_v46, %v241_v48 }
 0x15a   :  { %250 = vst [vmem:[#allocation4] sm:$0xff] %v246_v49 }
 0x15c   :  { %v245_v50 = vpop.permute.xlu1 %244 }
 0x15d   :  { %v247_v51 = vsel %vm149_vm1, %v243_v47, %v245_v50 }
 0x15e   :  { %251 = vst [vmem:[#allocation4 + $0x8] sm:$0xff] %v247_v51 }
 0x15f   :  { %359 = shalt.err (!%p356_p4)
}
 0x160   :  { %s360_s13 = scalar_lea.hbm %s531_s6, 256 }
 0x161   :  { %p361_p5 = scmp.ne.s32.totalorder %s531_s6, %s360_s13  ;;  %p364_p6 = scmp.lt.u32.totalorder %s360_s13, %s531_s6 }
 0x163   :  { %p366_p7 = pnand %p364_p6, %p361_p5 }
 0x165   :  { %369 = shalt.err (!%p366_p7)
}
 0x166   :  { %s399_s18 = smov 128   ;;  %s400_s19 = smov 8   ;;  %v286_v52 = vld [vmem:[%s529_s4] ss:$0 sm:$0xff]  ;;  %vm231_vm2 = vcmask 130048  }
 0x167   :  { %275 = dma.vmem_to_hbm [thread:$0]  %s270_s3, 256, %s531_s6, [#allocation5], %s399_s18, %s399_s18, %s400_s19  }
 0x168   :  { %s401_s23 = smov [#allocation2]  }
 0x169   :  { %s257_s24 = sshll.u32 %s401_s23, 4  ;;  %s258_s24 = int_to_ptr.vmem [resolvable:$true] %s257_s24 }
 0x16a   :  { %s370_s25 = scalar_lea.vmem %s258_s24, 256  ;;  %p375_p9 = scmp.lt.s32.totalorder %s258_s24, %s258_s24 }
 0x16b   :  { %p371_p8 = scmp.ne.s32.totalorder %s258_s24, %s370_s25  ;;  %p376_p10 = scmp.lt.s32.totalorder %s370_s25, %s370_s25 }
 0x16d   :  { %p377_p11 = por %p376_p10, %p375_p9 }
 0x16f   :  { %p378_p12 = pnand %p377_p11, %p371_p8 }
 0x1bd   :  { %v317_v53 = vpop.f32.mrb[0].mxu1 }
 0x1be   :  { %v228_v54 = vadd.f32 %v317_v53, %v286_v52  ;;  %v222_v55 = vpop.f32.mrb[1].mxu1 }
 0x1bf   :  { %v223_v56 = vadd.f32 %v286_v52, %v222_v55 }
 0x1c0   :  { %233 = vst.msk [vmem:[#allocation2 + $0x8] sm:$0xff] %vm231_vm2, %v228_v54 }
 0x1c1   :  { %232 = vst.msk [vmem:[#allocation2] sm:$0xff] %vm231_vm2, %v223_v56 }
 0x1c2   :  { %381 = shalt.err (!%p378_p12)
}
 0x1c3   :  { %s382_s4 = scalar_lea.hbm %s530_s5, 256 }
 0x1c4   :  { %p383_p13 = scmp.ne.s32.totalorder %s530_s5, %s382_s4  ;;  %p386_p0 = scmp.lt.u32.totalorder %s382_s4, %s530_s5 }
 0x1c6   :  { %p388_p1 = pnand %p386_p0, %p383_p13 }
 0x1c8   :  { %391 = shalt.err (!%p388_p1)
}
 0x1c9   :  { %263 = dma.vmem_to_hbm [thread:$0]  %s258_s24, 256, %s530_s5, [#allocation3], %s399_s18, %s399_s18, %s400_s19  }
 0x1ca   :  { %392 = dma.done.wait [#allocation3], 256  }
 0x1cb   :  { %393 = vsyncadd [#allocation3], 4294967040 }
 0x1cc   :  { %394 = dma.done.wait [#allocation5], 256  }
 0x1cd   :  { %395 = vsyncadd [#allocation5], 4294967040 }
 0x1ce   :  { %282 = vsyncpa [#allocation3], 1 }
 0x1cf   :  { %283 = vsyncpa [#allocation5], 1 }

</bundles_post_ra>
